<compile_context>
chip_gen: v6e
topology: v6e:2x2x1
jax: 0.10.0
libtpu: 0.0.40
codegen_flags: <defaults>
</compile_context>

<pallas_src>
import jax
import jax.numpy as jnp
from jax.experimental import pallas as pl
from jax.experimental.pallas import tpu as pltpu

IN_FEATS = 3
HIDDEN = 128


def _round_up(x, m):
    return (x + m - 1) // m * m


def model_action_kernel(state_ref, eps_ref, w1_ref, b1_ref, wh_ref, bh_ref, out_ref):
    # fc_state: Linear(3, 128) + ReLU  — 3 broadcast FMAs on the VPU (K=3 would waste the MXU).
    x = state_ref[...]                                   # (TB, 3)
    w1 = w1_ref[...]                                     # (3, 128)
    h = (x[:, 0:1] * w1[0:1, :]
         + x[:, 1:2] * w1[1:2, :]
         + x[:, 2:3] * w1[2:3, :]
         + b1_ref[...])                                  # (TB, 128)
    h = jnp.maximum(h, 0.0)

    # Fused heads: row 0 = mu weights, row 1 = std weights. VPU multiply + lane reduce.
    wh = wh_ref[...]                                     # (2, 128)
    mu = jnp.sum(h * wh[0:1, :], axis=-1, keepdims=True) + bh_ref[0]       # (TB, 1)
    pre_std = jnp.sum(h * wh[1:2, :], axis=-1, keepdims=True) + bh_ref[1]  # (TB, 1)
    std = jnp.maximum(jax.nn.softplus(pre_std), 1e-6)

    # Normal(mu, std).rsample() == mu + std * eps ; then tanh and scale by 35.
    out_ref[...] = jnp.tanh(mu + std * eps_ref[...]) * 35.0


def model_action(state, eps, params, *, tile_batch=512):
    """state: (B, 3) f32, eps: (B, 1) f32 standard normal. Returns (B, 1) f32."""
    w1, b1, wmu, bmu, wstd, bstd = params
    B = state.shape[0]

    # Fuse the two heads: lane-dense (2, 128) weight rows + (2,) scalar biases for SMEM.
    w_heads = jnp.concatenate([wmu.T, wstd.T], axis=0).astype(jnp.float32)          # (2, 128)
    b_heads = jnp.concatenate(
        [jnp.reshape(bmu, (-1,)), jnp.reshape(bstd, (-1,))]).astype(jnp.float32)    # (2,)

    # Batch tile: multiple of 8 (sublane), capped by the (padded) batch itself.
    tb = min(_round_up(tile_batch, 8), _round_up(max(B, 8), 8))
    b_pad = _round_up(max(B, 8), tb)
    if b_pad != B:
        state = jnp.pad(state, ((0, b_pad - B), (0, 0)))
        eps = jnp.pad(eps, ((0, b_pad - B), (0, 0)))

    cost = pl.CostEstimate(
        flops=2 * b_pad * (IN_FEATS * HIDDEN + 2 * HIDDEN),
        transcendentals=4 * b_pad,
        bytes_accessed=4 * (b_pad * (IN_FEATS + 1 + 1)
                            + IN_FEATS * HIDDEN + HIDDEN + 2 * HIDDEN + 2),
    )

    out = pl.pallas_call(
        model_action_kernel,
        out_shape=jax.ShapeDtypeStruct((b_pad, 1), jnp.float32),
        grid=(b_pad // tb,),
        in_specs=[
            pl.BlockSpec((tb, IN_FEATS), lambda i: (i, 0)),      # state  (streamed)
            pl.BlockSpec((tb, 1), lambda i: (i, 0)),             # eps    (streamed)
            pl.BlockSpec((IN_FEATS, HIDDEN), lambda i: (0, 0)),  # w1     (VMEM-resident)
            pl.BlockSpec((1, HIDDEN), lambda i: (0, 0)),         # b1     (VMEM-resident)
            pl.BlockSpec((2, HIDDEN), lambda i: (0, 0)),         # fused head weights
            pl.BlockSpec(memory_space=pltpu.MemorySpace.SMEM),   # fused head biases (scalars)
        ],
        out_specs=pl.BlockSpec((tb, 1), lambda i: (i, 0)),
        compiler_params=pltpu.CompilerParams(
            dimension_semantics=("parallel",)),                  # megacore on v7x
        cost_estimate=cost,
    )(state, eps, w1, b1, w_heads, b_heads)

    return out[:B]


def init_params(key):
    """Deterministic init mimicking PyTorch Linear default (U[-1/sqrt(fan_in), 1/sqrt(fan_in)])."""
    k1, k2, k3, k4, k5, k6 = jax.random.split(key, 6)
    lim1 = 1.0 / jnp.sqrt(jnp.float32(IN_FEATS))
    lim2 = 1.0 / jnp.sqrt(jnp.float32(HIDDEN))
    w1 = jax.random.uniform(k1, (IN_FEATS, HIDDEN), jnp.float32, -lim1, lim1)
    b1 = jax.random.uniform(k2, (1, HIDDEN), jnp.float32, -lim1, lim1)
    wmu = jax.random.uniform(k3, (HIDDEN, 1), jnp.float32, -lim2, lim2)
    bmu = jax.random.uniform(k4, (1, 1), jnp.float32, -lim2, lim2)
    wstd = jax.random.uniform(k5, (HIDDEN, 1), jnp.float32, -lim2, lim2)
    bstd = jax.random.uniform(k6, (1, 1), jnp.float32, -lim2, lim2)
    return (w1, b1, wmu, bmu, wstd, bstd)


def reference(state, eps, params):
    """Pure-JAX reference of the PyTorch forward (with the same eps)."""
    w1, b1, wmu, bmu, wstd, bstd = params
    h = jnp.maximum(state @ w1 + b1, 0.0)
    mu = h @ wmu + bmu
    std = jnp.maximum(jax.nn.softplus(h @ wstd + bstd), 1e-6)
    return jnp.tanh(mu + std * eps) * 35.0


if __name__ == "__main__":
    key = jax.random.PRNGKey(0)
    k_param, k_state, k_eps = jax.random.split(key, 3)

    params = init_params(k_param)

    # Small batch consistent with the module's (B, 3) state input.
    B = 8
    state = jax.random.normal(k_state, (B, IN_FEATS), jnp.float32)
    eps = jax.random.normal(k_eps, (B, 1), jnp.float32)
    out = jax.block_until_ready(model_action(state, eps, params))
    ref = reference(state, eps, params)
    assert out.shape == (B, 1)
    assert jnp.allclose(out, ref, atol=1e-4, rtol=1e-4)

    # Multi-tile path: non-multiple-of-tile batch exercises padding + grid streaming.
    B2 = 300
    state2 = jax.random.normal(jax.random.PRNGKey(1), (B2, IN_FEATS), jnp.float32)
    eps2 = jax.random.normal(jax.random.PRNGKey(2), (B2, 1), jnp.float32)
    out2 = jax.block_until_ready(model_action(state2, eps2, params, tile_batch=128))
    ref2 = reference(state2, eps2, params)
    assert out2.shape == (B2, 1)
    assert jnp.allclose(out2, ref2, atol=1e-4, rtol=1e-4)

    print("KERNEL_OK")
</pallas_src>

<mosaic_0001>
module attributes {stable_mosaic.version = 11 : i64} {
  func.func @model_action_kernel(%arg0: i32, %arg1: memref<8x3xf32, #tpu.memory_space<vmem>>, %arg2: memref<8x1xf32, #tpu.memory_space<vmem>>, %arg3: memref<3x128xf32, #tpu.memory_space<vmem>>, %arg4: memref<1x128xf32, #tpu.memory_space<vmem>>, %arg5: memref<2x128xf32, #tpu.memory_space<vmem>>, %arg6: memref<2xf32, #tpu.memory_space<smem>>, %arg7: memref<8x1xf32, #tpu.memory_space<vmem>>) attributes {dimension_semantics = [#tpu.dimension_semantics<parallel>], iteration_bounds = array<i64: 1>, scalar_prefetch = 0 : i64, scratch_operands = 0 : i64, tpu.core_type = #tpu.core_type<tc>, window_params = [{transform_indices = @transform_0, window_bounds = array<i64: 8, 3>}, {transform_indices = @transform_1, window_bounds = array<i64: 8, 1>}, {pipeline_mode = #tpu.pipeline_mode<synchronous>, transform_indices = @transform_2, window_bounds = array<i64: 3, 128>}, {pipeline_mode = #tpu.pipeline_mode<synchronous>, transform_indices = @transform_3, window_bounds = array<i64: 1, 128>}, {pipeline_mode = #tpu.pipeline_mode<synchronous>, transform_indices = @transform_4, window_bounds = array<i64: 2, 128>}, {transform_indices = @transform_5, window_bounds = array<i64: 2>}, {transform_indices = @transform_6, window_bounds = array<i64: 8, 1>}]} {
    %c0 = arith.constant 0 : index
    %c0_0 = arith.constant 0 : index
    %0 = vector.load %arg1[%c0, %c0_0] : memref<8x3xf32, #tpu.memory_space<vmem>>, vector<8x3xf32>
    %c0_1 = arith.constant 0 : index
    %c0_2 = arith.constant 0 : index
    %1 = vector.load %arg3[%c0_1, %c0_2] : memref<3x128xf32, #tpu.memory_space<vmem>>, vector<3x128xf32>
    %2 = vector.extract_strided_slice %0 {offsets = [0, 0], sizes = [8, 1], strides = [1, 1]} : vector<8x3xf32> to vector<8x1xf32>
    %3 = vector.extract_strided_slice %1 {offsets = [0, 0], sizes = [1, 128], strides = [1, 1]} : vector<3x128xf32> to vector<1x128xf32>
    %4 = vector.broadcast %2 : vector<8x1xf32> to vector<8x128xf32>
    %5 = vector.broadcast %3 : vector<1x128xf32> to vector<8x128xf32>
    %6 = arith.mulf %4, %5 : vector<8x128xf32>
    %7 = vector.extract_strided_slice %0 {offsets = [0, 1], sizes = [8, 1], strides = [1, 1]} : vector<8x3xf32> to vector<8x1xf32>
    %8 = vector.extract_strided_slice %1 {offsets = [1, 0], sizes = [1, 128], strides = [1, 1]} : vector<3x128xf32> to vector<1x128xf32>
    %9 = vector.broadcast %7 : vector<8x1xf32> to vector<8x128xf32>
    %10 = vector.broadcast %8 : vector<1x128xf32> to vector<8x128xf32>
    %11 = arith.mulf %9, %10 : vector<8x128xf32>
    %12 = arith.addf %6, %11 : vector<8x128xf32>
    %13 = vector.extract_strided_slice %0 {offsets = [0, 2], sizes = [8, 1], strides = [1, 1]} : vector<8x3xf32> to vector<8x1xf32>
    %14 = vector.extract_strided_slice %1 {offsets = [2, 0], sizes = [1, 128], strides = [1, 1]} : vector<3x128xf32> to vector<1x128xf32>
    %15 = vector.broadcast %13 : vector<8x1xf32> to vector<8x128xf32>
    %16 = vector.broadcast %14 : vector<1x128xf32> to vector<8x128xf32>
    %17 = arith.mulf %15, %16 : vector<8x128xf32>
    %18 = arith.addf %12, %17 : vector<8x128xf32>
    %c0_3 = arith.constant 0 : index
    %c0_4 = arith.constant 0 : index
    %19 = vector.load %arg4[%c0_3, %c0_4] : memref<1x128xf32, #tpu.memory_space<vmem>>, vector<1x128xf32>
    %20 = vector.broadcast %19 : vector<1x128xf32> to vector<8x128xf32>
    %21 = arith.addf %18, %20 : vector<8x128xf32>
    %cst = arith.constant 0.000000e+00 : f32
    %22 = vector.broadcast %cst : f32 to vector<8x128xf32>
    %23 = arith.maximumf %21, %22 : vector<8x128xf32>
    %c0_5 = arith.constant 0 : index
    %c0_6 = arith.constant 0 : index
    %24 = vector.load %arg5[%c0_5, %c0_6] : memref<2x128xf32, #tpu.memory_space<vmem>>, vector<2x128xf32>
    %25 = vector.extract_strided_slice %24 {offsets = [0, 0], sizes = [1, 128], strides = [1, 1]} : vector<2x128xf32> to vector<1x128xf32>
    %26 = vector.broadcast %25 : vector<1x128xf32> to vector<8x128xf32>
    %27 = arith.mulf %23, %26 : vector<8x128xf32>
    %cst_7 = arith.constant dense<0.000000e+00> : vector<8xf32>
    %28 = vector.multi_reduction <add>, %27, %cst_7 [1] : vector<8x128xf32> to vector<8xf32>
    %29 = vector.shape_cast %28 : vector<8xf32> to vector<8x1xf32>
    %c0_8 = arith.constant 0 : index
    %30 = memref.load %arg6[%c0_8] : memref<2xf32, #tpu.memory_space<smem>>
    %31 = vector.broadcast %30 : f32 to vector<8x1xf32>
    %32 = arith.addf %29, %31 : vector<8x1xf32>
    %33 = vector.extract_strided_slice %24 {offsets = [1, 0], sizes = [1, 128], strides = [1, 1]} : vector<2x128xf32> to vector<1x128xf32>
    %34 = vector.broadcast %33 : vector<1x128xf32> to vector<8x128xf32>
    %35 = arith.mulf %23, %34 : vector<8x128xf32>
    %cst_9 = arith.constant dense<0.000000e+00> : vector<8xf32>
    %36 = vector.multi_reduction <add>, %35, %cst_9 [1] : vector<8x128xf32> to vector<8xf32>
    %37 = vector.shape_cast %36 : vector<8xf32> to vector<8x1xf32>
    %c1 = arith.constant 1 : index
    %38 = memref.load %arg6[%c1] : memref<2xf32, #tpu.memory_space<smem>>
    %39 = vector.broadcast %38 : f32 to vector<8x1xf32>
    %40 = arith.addf %37, %39 : vector<8x1xf32>
    %cst_10 = arith.constant 0.000000e+00 : f32
    %41 = vector.broadcast %cst_10 : f32 to vector<8x1xf32>
    %42 = arith.maximumf %40, %41 : vector<8x1xf32>
    %43 = vector.broadcast %cst_10 : f32 to vector<8x1xf32>
    %44 = arith.subf %40, %43 : vector<8x1xf32>
    %45 = arith.cmpf one, %44, %44 : vector<8x1xf32>
    %46 = vector.broadcast %cst_10 : f32 to vector<8x1xf32>
    %47 = arith.addf %40, %46 : vector<8x1xf32>
    %48 = math.absf %44 : vector<8x1xf32>
    %cst_11 = arith.constant 0.000000e+00 : f32
    %49 = vector.broadcast %cst_11 : f32 to vector<8x1xf32>
    %50 = arith.subf %49, %48 : vector<8x1xf32>
    %51 = math.exp %50 : vector<8x1xf32>
    %52 = math.log1p %51 : vector<8x1xf32>
    %53 = arith.addf %42, %52 : vector<8x1xf32>
    %54 = arith.select %45, %47, %53 : vector<8x1xi1>, vector<8x1xf32>
    %cst_12 = arith.constant 9.99999997E-7 : f32
    %55 = vector.broadcast %cst_12 : f32 to vector<8x1xf32>
    %56 = arith.maximumf %54, %55 : vector<8x1xf32>
    %c0_13 = arith.constant 0 : index
    %c0_14 = arith.constant 0 : index
    %57 = vector.load %arg2[%c0_13, %c0_14] : memref<8x1xf32, #tpu.memory_space<vmem>>, vector<8x1xf32>
    %58 = arith.mulf %56, %57 : vector<8x1xf32>
    %59 = arith.addf %32, %58 : vector<8x1xf32>
    %60 = math.tanh %59 : vector<8x1xf32>
    %cst_15 = arith.constant 3.500000e+01 : f32
    %61 = vector.broadcast %cst_15 : f32 to vector<8x1xf32>
    %62 = arith.mulf %60, %61 : vector<8x1xf32>
    %c0_16 = arith.constant 0 : index
    %c0_17 = arith.constant 0 : index
    %63 = vector.load %arg7[%c0_16, %c0_17] : memref<8x1xf32, #tpu.memory_space<vmem>>, vector<8x1xf32>
    tpu.vector_store %arg7[%c0_16, %c0_17], %62 {strides = array<i32>} : memref<8x1xf32, #tpu.memory_space<vmem>>, vector<8x1xf32>,
    return
  }
  func.func @transform_0(%arg0: i32) -> (i32, i32) {
    %c0_i32 = arith.constant 0 : i32
    %c0_i32_0 = arith.constant 0 : i32
    return %arg0, %c0_i32 : i32, i32
  }
  func.func @transform_1(%arg0: i32) -> (i32, i32) {
    %c0_i32 = arith.constant 0 : i32
    %c0_i32_0 = arith.constant 0 : i32
    return %arg0, %c0_i32 : i32, i32
  }
  func.func @transform_2(%arg0: i32) -> (i32, i32) {
    %c0_i32 = arith.constant 0 : i32
    %c0_i32_0 = arith.constant 0 : i32
    %c0_i32_1 = arith.constant 0 : i32
    return %c0_i32, %c0_i32_0 : i32, i32
  }
  func.func @transform_3(%arg0: i32) -> (i32, i32) {
    %c0_i32 = arith.constant 0 : i32
    %c0_i32_0 = arith.constant 0 : i32
    %c0_i32_1 = arith.constant 0 : i32
    return %c0_i32, %c0_i32_0 : i32, i32
  }
  func.func @transform_4(%arg0: i32) -> (i32, i32) {
    %c0_i32 = arith.constant 0 : i32
    %c0_i32_0 = arith.constant 0 : i32
    %c0_i32_1 = arith.constant 0 : i32
    return %c0_i32, %c0_i32_0 : i32, i32
  }
  func.func @transform_5(%arg0: i32) -> i32 {
    %c0_i32 = arith.constant 0 : i32
    %c0_i32_0 = arith.constant 0 : i32
    return %c0_i32 : i32
  }
  func.func @transform_6(%arg0: i32) -> (i32, i32) {
    %c0_i32 = arith.constant 0 : i32
    %c0_i32_0 = arith.constant 0 : i32
    return %arg0, %c0_i32 : i32, i32
  }
}

</mosaic_0001>

<bundles_post_ra>
// kernel: tpu_custom_call.1
= control target key start
LH: loop header
LB: loop body
LE: loop exit
PB: predicated region body
PF: predicated region fallthrough
CT: control target
= control target key end

     0   :  { %11 = vsyncpa [#allocation3], 0  ;;  %s219_s0 = inlined_call_operand.vmem [shape: f32[8,3], index: 0, kind: input, shape index: {}]   ;;  %s220_s1 = inlined_call_operand.vmem [shape: f32[8,1], index: 1, kind: input, shape index: {}]   ;;  %s221_s2 = inlined_call_operand.vmem [shape: f32[3,128], index: 2, kind: input, shape index: {}]   ;;  %s222_s3 = inlined_call_operand.vmem [shape: f32[1,128], index: 3, kind: input, shape index: {}]   ;;  %s223_s4 = inlined_call_operand.vmem [shape: f32[2,128], index: 4, kind: input, shape index: {}]   ;;  %s224_s5 = inlined_call_operand.vmem [shape: f32[2], index: 5, kind: input, shape index: {}]   ;;  %s225_s6 = inlined_call_operand.vmem [shape: f32[8,1], index: 6, kind: output, shape index: {}]  }
   0x1   :  { %s28_s23 = sshll.u32 %s224_s5, 4  ;;  %s29_s23 = int_to_ptr.vmem [resolvable:$true] %s28_s23 }
   0x2   :  { %s145_s24 = scalar_lea.vmem %s29_s23, 16  ;;  %p150_p1 = scmp.lt.s32.totalorder %s29_s23, %s29_s23 }
   0x3   :  { %p146_p0 = scmp.ne.s32.totalorder %s29_s23, %s145_s24  ;;  %p151_p2 = scmp.lt.s32.totalorder %s145_s24, %s145_s24 }
   0x5   :  { %p152_p3 = por %p151_p2, %p150_p1 }
   0x7   :  { %p153_p4 = pnand %p152_p3, %p146_p0 }
   0x9   :  { %156 = shalt.err (!%p153_p4)
}
   0xa   :  { %s159_s25 = smov [#allocation2]  }
   0xb   :  { %31 = dma.vmem_to_smem %s29_s23, 16, %s159_s25, [#allocation3]  }
   0xc   :  { %157 = dma.done.wait [#allocation3], 16  }
   0xd   :  { %158 = vsyncadd [#allocation3], 4294967280 }
   0xe   :  { %35 = sfence }
   0xf   :  { %v36_v0 = vld [vmem:[%s219_s0] sm:$0xff]  ;;  %v160_v1 = vmov 0   ;;  %v161_v2 = vmov 2   ;;  %v162_v3 = vmov 1   ;;  %v43_v4 = vlaneseq }
  0x10   :  { %135 = vset.pattern.permute.xlu0 %v160_v1  ;;  %137 = vset.pattern.permute.xlu1 %v161_v2  ;;  %v37_v9 = vld [vmem:[%s221_s2] sm:$0x7]  ;;  %s130_s2 = sld [smem:[#allocation2 + $0x1]]  ;;  %vm122_vm2 = vcmask 7168  }
  0x11   :  { %40 = vperm.xlu0 %135, %v36_v0   ;;  %59 = vperm.xlu1 %137, %v36_v0   ;;  %v44_v5 = vshrl.u32 %v43_v4, 7  ;;  %v129_v20 = vld [vmem:[%s222_s3] ss:$0 sm:$0xff]  ;;  %s85_s3 = sld [smem:[#allocation2]] }
  0x12   :  { %v77_v21 = vld [vmem:[%s223_s4] sm:$0x3] }
  0x13   :  { %v45_v6 = vsub.s32 0, %v44_v5  ;;  %v54_v7 = vsub.s32 1, %v44_v5  ;;  %v64_v8 = vsub.s32 2, %v44_v5  ;;  %v117_v48 = vld [vmem:[%s220_s1] sm:$0xff] }
  0x15   :  { %136 = vset.pattern.permute.xlu0 %v162_v3  ;;  %v46_v11 = vrot.slane %v37_v9, %v45_v6  ;;  %v55_v12 = vrot.slane %v37_v9, %v54_v7  ;;  %v65_v13 = vrot.slane %v37_v9, %v64_v8  ;;  %v91_v24 = vrot.slane %v77_v21, %v54_v7 }
  0x16   :  { %49 = vperm.xlu0 %136, %v36_v0   ;;  %v81_v25 = vrot.slane %v77_v21, %v45_v6  ;;  %v96_v29 = vstv %s130_s2 }
  0x17   :  { %v86_v46 = vstv %s85_s3 }
  0x1a   :  { %138 = vset.pattern.permute.xlu0 %v161_v2 }
  0x8c   :  { %v41_v10 = vpop.permute.xlu0 %40  ;;  %v60_v14 = vpop.permute.xlu1 %59 }
  0x8d   :  { %v47_v16 = vmul.f32 %v46_v11, %v41_v10  ;;  %v66_v18 = vmul.f32 %v65_v13, %v60_v14 }
  0x91   :  { %v50_v15 = vpop.permute.xlu0 %49 }
  0x92   :  { %v56_v17 = vmul.f32 %v55_v12, %v50_v15 }
  0x94   :  { %v57_v19 = vadd.f32 %v56_v17, %v47_v16 }
  0x96   :  { %v67_v22 = vadd.f32 %v66_v18, %v57_v19 }
  0x98   :  { %v75_v23 = vadd.f32 %v129_v20, %v67_v22 }
  0x9a   :  { %v76_v26 = vmax.f32 %v75_v23, 0.0 }
  0x9c   :  { %v92_v27 = vmul.f32 %v91_v24, %v76_v26  ;;  %v82_v28 = vmul.f32 %v81_v25, %v76_v26 }
  0x9e   :  { %93 = vadd.xlane.f32.xlu1 %v92_v27  ;;  %83 = vadd.xlane.f32.xlu0 %v82_v28 }
 0x127   :  { %v94_v30 = vpop.xlane.xlu1 %93  ;;  %v84_v49 = vpop.xlane.xlu0 %83 }
 0x128   :  { %v97_v31 = vadd.f32 %v96_v29, %v94_v30  ;;  %v87_v52 = vadd.f32 %v86_v46, %v84_v49 }
 0x12a   :  { %v101_v32 = vand.u32 2147483647, %v97_v31  ;;  %v98_v43 = vmax.f32 %v97_v31, 0.0  ;;  %vm99_vm1 = vcmp.ne.f32.partialorder %v97_v31, %v97_v31 }
 0x12c   :  { %v102_v33 = vsub.f32 0.0, %v101_v32 }
 0x12e   :  { %v103_v34 = vmul.f32 1.442695, %v102_v33 }
 0x130   :  { %139 = vpow2.f32 %v103_v34 }
 0x13d   :  { %v140_v35 = vpop.eup %139 }
 0x13e   :  { %v105_v36 = vadd.f32 1.0, %v140_v35  ;;  %v108_v37 = vmul.f32 -0.5, %v140_v35  ;;  %v111_v39 = vand.u32 2147483647, %v140_v35 }
 0x140   :  { %141 = vlog2.f32 %v105_v36  ;;  %v109_v38 = vadd.f32 1.0, %v108_v37  ;;  %vm112_vm0 = vcmp.lt.f32.partialorder %v111_v39, 0.0004427343 }
 0x142   :  { %v110_v42 = vmul.f32 %v140_v35, %v109_v38 }
 0x14d   :  { %v142_v40 = vpop.eup %141 }
 0x14e   :  { %v107_v41 = vmul.f32 0.6931472, %v142_v40 }
 0x150   :  { %v113_v44 = vsel %vm112_vm0, %v110_v42, %v107_v41 }
 0x151   :  { %v114_v45 = vadd.f32 %v113_v44, %v98_v43 }
 0x153   :  { %v115_v47 = vsel %vm99_vm1, %v97_v31, %v114_v45 }
 0x154   :  { %v116_v50 = vmax.f32 %v115_v47, 1e-06 }
 0x156   :  { %v118_v51 = vmul.f32 %v117_v48, %v116_v50 }
 0x158   :  { %v119_v53 = vadd.f32 %v118_v51, %v87_v52 }
 0x15a   :  { %143 = vtanh.f32 %v119_v53 }
 0x167   :  { %v144_v54 = vpop.eup %143 }
 0x168   :  { %v121_v55 = vmul.f32 35.0, %v144_v54 }
 0x16a   :  { %123 = vst.msk [vmem:[%s225_s6] sm:$0xff] %vm122_vm2, %v121_v55 }
 0x16b   :  { %128 = vsyncpa [#allocation3], 1 }

</bundles_post_ra>
